<compile_context>
chip_gen: v7x
topology: tpu7x:2x2x1
jax: 0.10.0
libtpu: 0.0.40
codegen_flags: <defaults>
</compile_context>

<pallas_src>
import functools

import jax
import jax.numpy as jnp
import numpy as np
from jax.experimental import pallas as pl
from jax.experimental.pallas import tpu as pltpu

BETA = 0.25  # Cauchy distribution beta from the reference code


def _round_up(x, m):
    return (x + m - 1) // m * m


@functools.lru_cache(maxsize=None)
def _vmem_budget_bytes():
    """Scoped-VMEM budget ~= half of physical VMEM per core.

    v5e/v6e: 128 MiB physical -> 64 MiB budget (bigger tiles);
    v7x:      64 MiB physical -> 32 MiB budget (re-derived, smaller footprint).
    """
    cap = 128 * 1024 * 1024
    try:
        cap = int(pltpu.get_tpu_info().vmem_capacity_bytes)
    except Exception:  # pragma: no cover - older jax / non-TPU fallback
        pass
    return max(32 * 1024 * 1024, min(96 * 1024 * 1024, cap // 2))


def _linear_row_tile(M):
    budget = _vmem_budget_bytes()
    tm_max = 1024 if budget >= 64 * 1024 * 1024 else 512
    tm = min(tm_max, _round_up(M, 16))
    if tm >= M and M > 16:
        # prefer >=2 grid steps so both v7x TensorCores get work
        tm = _round_up(-(-M // 2), 16)
    return tm


def _window_block(N):
    budget = _vmem_budget_bytes()
    nb_max = 512 if budget >= 64 * 1024 * 1024 else 256
    if N <= 128:
        return 128                      # lane-dense minimum (128 lanes)
    nb = _round_up(-(-N // 2), 128)     # aim for >=2 grid steps (v7x megacore)
    return min(nb, nb_max)


# ----------------------------- Pallas kernels ------------------------------

def _linear_kernel(x_ref, w_ref, b_ref, o_ref):
    # x: (tm, Din) f32/bf16, w: (Din, Dout) compute dtype, b: (1, Dout) f32
    w = w_ref[...]
    x = x_ref[...].astype(w.dtype)      # activation cast fused into the kernel
    acc = jnp.dot(x, w, preferred_element_type=jnp.float32)
    o_ref[...] = (acc + b_ref[...]).astype(o_ref.dtype)


def pallas_linear(x2d, w, b, *, out_dtype=jnp.float32):
    """y = x2d @ w + b, row-tiled with a 'parallel' grid axis (pipelined DMA)."""
    M, Din = x2d.shape
    Dout = w.shape[1]
    tm = _linear_row_tile(M)
    Mp = _round_up(M, tm)
    if Mp != M:
        x2d = jnp.pad(x2d, ((0, Mp - M), (0, 0)))
    b2 = b.reshape(1, Dout).astype(jnp.float32)
    # TODO(synk): add a K-loop grid axis over Din with a VMEM f32 accumulator
    # (and pad Dout/Din to multiples of 256 for the v6e/v7x MXU) if the model
    # dims grow beyond a few thousand; at these sizes one K block is fine.
    out = pl.pallas_call(
        _linear_kernel,
        out_shape=jax.ShapeDtypeStruct((Mp, Dout), out_dtype),
        grid=(Mp // tm,),
        in_specs=[
            pl.BlockSpec((tm, Din), lambda i: (i, 0)),
            pl.BlockSpec((Din, Dout), lambda i: (0, 0)),
            pl.BlockSpec((1, Dout), lambda i: (0, 0)),
        ],
        out_specs=pl.BlockSpec((tm, Dout), lambda i: (i, 0)),
        compiler_params=pltpu.CompilerParams(
            dimension_semantics=("parallel",),
            vmem_limit_bytes=_vmem_budget_bytes(),
        ),
    )(x2d, w, b2)
    return out[:M] if Mp != M else out


def _make_attn_window_kernel(exact_softmax):
    def kernel(q_ref, k_ref, v_ref, mask_ref, o_ref):
        # Windows-on-lanes layout (last dim nb is a multiple of 128):
        #   q_ref:    (step, Dq, nb)   kept center query rows of each window
        #   k_ref:    (W,    Dq, nb)
        #   v_ref:    (W,    Dv, nb)
        #   mask_ref: (step, W,  nb)   Cauchy * diag-zero * 1/sqrt(W), pre-broadcast
        #   o_ref:    (step, Dv, nb)
        step, _, nb = q_ref.shape
        w_len = k_ref.shape[0]
        dv = v_ref.shape[1]

        # Elementwise math stays f32 (v5e VPU/EUP have no bf16); bf16 is only
        # used to halve the HBM/VMEM bytes of the operands.
        q = q_ref[...].astype(jnp.float32)
        k = k_ref[...].astype(jnp.float32)
        v = v_ref[...].astype(jnp.float32)

        # scores[i, j, n] = sum_d q[i, d, n] * k[j, d, n]
        # VPU multiplies of full (Dq, nb) vreg tiles + a sublane reduction over d;
        # all 128 lanes (windows) busy, no per-window MXU matmuls.
        s = jnp.sum(q[:, None, :, :] * k[None, :, :, :], axis=2)      # (step, W, nb)
        s = s * mask_ref[...]                   # score scale folded into the mask

        m = jnp.max(s, axis=1, keepdims=True)                         # (step, 1, nb)
        p = jnp.exp(s - m)
        denom = jnp.sum(p, axis=1, keepdims=True)
        if exact_softmax:
            p = p / denom                       # exact divide (debug/check path)
        else:
            p = p * pl.reciprocal(denom, approx=True)   # EUP slot, nearly free

        # out[i, d, n] = sum_j p[i, j, n] * v[j, d, n]
        # contraction over the small window axis as an unrolled broadcast-FMA loop
        o = jnp.zeros((step, dv, nb), jnp.float32)
        for j in range(w_len):
            o = o + p[:, j, :][:, None, :] * v[j][None, :, :]
        o_ref[...] = o.astype(o_ref.dtype)

    return kernel


def pallas_window_attention(q_t, k_t, v_t, mask_c, *, exact_softmax=False,
                            out_dtype=None):
    """Moving-window attention with windows on the lane axis.

    q_t:    (step, Dq, N)   center query rows per window
    k_t:    (W,    Dq, N)
    v_t:    (W,    Dv, N)
    mask_c: (step, W)       multiplicative score mask (1/sqrt(W) folded in)
    returns (step, Dv, N)
    """
    step, Dq, N = q_t.shape
    W = k_t.shape[0]
    Dv = v_t.shape[1]
    out_dtype = out_dtype or q_t.dtype

    nb = _window_block(N)
    Np = _round_up(N, nb)
    if Np != N:
        padw = ((0, 0), (0, 0), (0, Np - N))
        # padded (all-zero) windows produce finite junk and are sliced off below;
        # they never alias real output positions (separate lane range).
        q_t = jnp.pad(q_t, padw)
        k_t = jnp.pad(k_t, padw)
        v_t = jnp.pad(v_t, padw)

    mask_b = jnp.broadcast_to(mask_c.astype(jnp.float32)[:, :, None], (step, W, nb))

    out = pl.pallas_call(
        _make_attn_window_kernel(exact_softmax),
        out_shape=jax.ShapeDtypeStruct((step, Dv, Np), out_dtype),
        grid=(Np // nb,),
        in_specs=[
            pl.BlockSpec((step, Dq, nb), lambda i: (0, 0, i)),
            pl.BlockSpec((W, Dq, nb), lambda i: (0, 0, i)),
            pl.BlockSpec((W, Dv, nb), lambda i: (0, 0, i)),
            pl.BlockSpec((step, W, nb), lambda i: (0, 0, 0)),
        ],
        out_specs=pl.BlockSpec((step, Dv, nb), lambda i: (0, 0, i)),
        compiler_params=pltpu.CompilerParams(
            dimension_semantics=("parallel",),          # megacore-shardable
            vmem_limit_bytes=_vmem_budget_bytes(),
        ),
    )(q_t, k_t, v_t, mask_b)
    return out[..., :N] if Np != N else out


# ----------------------------- module wrapper -------------------------------

def init_params(key, d_model, q, v, h):
    ks = jax.random.split(key, 8)

    def lin(kw, kb, fan_in, fan_out):
        bound = 1.0 / np.sqrt(fan_in)
        w = jax.random.uniform(kw, (fan_in, fan_out), jnp.float32, -bound, bound)
        b = jax.random.uniform(kb, (fan_out,), jnp.float32, -bound, bound)
        return w, b

    Wq, bq = lin(ks[0], ks[1], d_model, q * h)
    Wk, bk = lin(ks[2], ks[3], d_model, q * h)
    Wv, bv = lin(ks[4], ks[5], d_model, v * h)
    Wo, bo = lin(ks[6], ks[7], h * v, d_model)
    return dict(Wq=Wq, bq=bq, Wk=Wk, bk=bk, Wv=Wv, bv=bv, Wo=Wo, bo=bo)


def prepare_params(params, compute_dtype):
    """Cast the matmul weights ONCE (outside the forward) to the MXU dtype."""
    out = dict(params)
    for k in ("Wq", "Wk", "Wv", "Wo"):
        out[k] = params[k].astype(compute_dtype)
    return out


def _replicate_pad(x, pad):
    # F.pad(..., 'replicate') along the sequence dim
    return jnp.concatenate(
        [jnp.repeat(x[:, :1], pad, axis=1), x, jnp.repeat(x[:, -1:], pad, axis=1)],
        axis=1,
    )


def _dist_mask(window_size):
    # Cauchy mask with zeroed diagonal (host-side numpy).
    r = np.arange(window_size)
    dm = 1.0 / (1.0 + BETA * (r[:, None] - r[None, :]) ** 2)
    dm = dm * (np.ones((window_size, window_size)) - np.eye(window_size))
    return dm


def _center_mask(window_size, padding):
    # 1/sqrt(window_size) score scale folded in; restricted to the kept center
    # query rows of each window.
    dm = _dist_mask(window_size) / np.sqrt(window_size)
    return jnp.asarray(dm[padding:window_size - padding, :], jnp.float32)


def mha_window_forward(params, query, key, value, *, q, v, h, window_size, padding,
                       exact_softmax=False):
    # TODO(synk): attention_size / mask='subsequent' branches (extra -inf masks)
    # are not exercised (module defaults: attention_size=None, mask=None).
    B, K, d_model = query.shape
    step = window_size - 2 * padding
    Lp = K + 2 * padding
    n_win = (Lp - window_size) // step + 1
    assert n_win * step == K, "sequence length must be a multiple of the window step"
    N = h * B * n_win                       # total windows, ordered (head, batch, win)

    cdt = params["Wq"].dtype                # compute dtype from the pre-cast weights

    # --- projections (MXU), activation/output casts fused into the kernels ---
    # Only the kept center rows of each window are queried and those are exactly
    # the original (unpadded) positions -> Q needs no replicate pad / gather.
    Qn = pallas_linear(query.reshape(B * K, d_model), params["Wq"], params["bq"],
                       out_dtype=cdt)                                  # (B*K, q*h)
    kp = _replicate_pad(key, padding).reshape(B * Lp, d_model)
    vp = _replicate_pad(value, padding).reshape(B * Lp, d_model)
    Kp = pallas_linear(kp, params["Wk"], params["bk"], out_dtype=cdt)  # (B*Lp, q*h)
    Vp = pallas_linear(vp, params["Wv"], params["bv"], out_dtype=cdt)  # (B*Lp, v*h)

    # --- layout plumbing: put the window axis on the LANES -------------------
    Q_t = (Qn.reshape(B, n_win, step, h, q)
             .transpose(2, 4, 3, 0, 1).reshape(step, q, N))            # (step, q, N)

    idx = jnp.arange(n_win)[:, None] * step + jnp.arange(window_size)[None, :]
    # TODO(synk): this overlapping-window gather still duplicates K/V by
    # window/step (2x) in HBM; expressing the overlap inside the pallas_call
    # (manual make_async_copy of contiguous [w*step, w*step+W) slabs) would
    # remove the duplication.
    K_t = (Kp.reshape(B, Lp, h, q)[:, idx]
             .transpose(2, 4, 3, 0, 1).reshape(window_size, q, N))     # (W, q, N)
    V_t = (Vp.reshape(B, Lp, h, v)[:, idx]
             .transpose(2, 4, 3, 0, 1).reshape(window_size, v, N))     # (W, v, N)

    mask_c = _center_mask(window_size, padding)

    attn = pallas_window_attention(Q_t, K_t, V_t, mask_c,
                                   exact_softmax=exact_softmax,
                                   out_dtype=cdt)                      # (step, v, N)

    # --- heads-concat back to (B*K, h*v), then the output projection ---------
    # TODO(synk): folding this transpose into the attention out_specs would save
    # one HBM round trip but would make the stored attention output lane-sparse
    # (h*v = 16 < 128); lane-dense writeback wins at these head dims.
    heads = (attn.reshape(step, v, h, B, n_win)
                 .transpose(3, 4, 0, 2, 1).reshape(B * K, h * v))
    out = pallas_linear(heads, params["Wo"], params["bo"], out_dtype=jnp.float32)
    return out.reshape(B, K, d_model)


# ----------------------------- pure-JAX reference ---------------------------

def mha_window_reference(params, query, key, value, *, q, v, h, window_size, padding):
    B, K, d_model = query.shape
    step = window_size - 2 * padding
    Lp = K + 2 * padding

    qp = _replicate_pad(query, padding)
    kp = _replicate_pad(key, padding)
    vp = _replicate_pad(value, padding)

    Qp = qp @ params["Wq"] + params["bq"]
    Kp = kp @ params["Wk"] + params["bk"]
    Vp = vp @ params["Wv"] + params["bv"]

    def to_heads(x, d):
        return x.reshape(B, Lp, h, d).transpose(2, 0, 1, 3).reshape(h * B, Lp, d)

    Qh, Kh, Vh = to_heads(Qp, q), to_heads(Kp, q), to_heads(Vp, v)
    n_win = (Lp - window_size) // step + 1
    idx = jnp.arange(n_win)[:, None] * step + jnp.arange(window_size)[None, :]
    Qw = Qh[:, idx, :].reshape(-1, window_size, q)
    Kw = Kh[:, idx, :].reshape(-1, window_size, q)
    Vw = Vh[:, idx, :].reshape(-1, window_size, v)

    scores = jnp.einsum("bid,bjd->bij", Qw, Kw) / np.sqrt(window_size)
    scores = scores * jnp.asarray(_dist_mask(window_size), jnp.float32)[None]
    scores = jax.nn.softmax(scores, axis=-1)
    attn = jnp.einsum("bij,bjd->bid", scores, Vw)

    attn = attn.reshape(h * B, n_win, window_size, v)
    attn = attn[:, :, padding:window_size - padding, :].reshape(h * B, n_win * step, v)
    heads = attn.reshape(h, B, n_win * step, v).transpose(1, 2, 0, 3)
    heads = heads.reshape(B, n_win * step, h * v)
    return heads @ params["Wo"] + params["bo"]


# ---------------------------------- main -------------------------------------

if __name__ == "__main__":
    # Small, consistent shapes: batch=2, seq K=8, d_model=16, q=v=8, h=2,
    # window_size=8, padding=2 -> step=4, n_win=2, output seq = 8 = K.
    B, K, d_model = 2, 8, 16
    q_dim, v_dim, h = 8, 8, 2
    window_size, padding = 8, 2

    root = jax.random.PRNGKey(0)
    kp_, kq_, kk_, kv_ = jax.random.split(root, 4)
    params = init_params(kp_, d_model, q_dim, v_dim, h)

    query = jax.random.normal(kq_, (B, K, d_model), jnp.float32)
    key = jax.random.normal(kk_, (B, K, d_model), jnp.float32)
    value = jax.random.normal(kv_, (B, K, d_model), jnp.float32)

    ref = mha_window_reference(
        params, query, key, value,
        q=q_dim, v=v_dim, h=h, window_size=window_size, padding=padding,
    )
    ref = np.asarray(jax.block_until_ready(ref))

    # f32 weights + exact softmax divide: tighter correctness check (remaining
    # differences come only from MXU accumulation order of the projections).
    p32 = prepare_params(params, jnp.float32)
    out_f32 = mha_window_forward(
        p32, query, key, value,
        q=q_dim, v=v_dim, h=h, window_size=window_size, padding=padding,
        exact_softmax=True,
    )
    out_f32 = np.asarray(jax.block_until_ready(out_f32))
    assert out_f32.shape == (B, K, d_model)
    np.testing.assert_allclose(out_f32, ref, rtol=5e-3, atol=5e-3)

    # bf16 MXU path (perf default): halves operand bytes, keeps f32 accumulation
    # and f32 softmax math; approx EUP reciprocal in the softmax denominator.
    pbf = prepare_params(params, jnp.bfloat16)
    out_bf16 = mha_window_forward(
        pbf, query, key, value,
        q=q_dim, v=v_dim, h=h, window_size=window_size, padding=padding,
    )
    out_bf16 = np.asarray(jax.block_until_ready(out_bf16))
    assert out_bf16.shape == (B, K, d_model)
    np.testing.assert_allclose(out_bf16, ref, rtol=1e-1, atol=1e-1)

    print("KERNEL_OK")
</pallas_src>

<mosaic_0001>
module attributes {stable_mosaic.version = 11 : i64} {
  func.func @_linear_kernel(%arg0: i32, %arg1: memref<16x16xf32, #tpu.memory_space<vmem>>, %arg2: memref<16x16xf32, #tpu.memory_space<vmem>>, %arg3: memref<1x16xf32, #tpu.memory_space<vmem>>, %arg4: memref<16x16xf32, #tpu.memory_space<vmem>>) attributes {dimension_semantics = [#tpu.dimension_semantics<parallel>], iteration_bounds = array<i64: 1>, scalar_prefetch = 0 : i64, scratch_operands = 0 : i64, tpu.core_type = #tpu.core_type<tc>, window_params = [{transform_indices = @transform_0, window_bounds = array<i64: 16, 16>}, {pipeline_mode = #tpu.pipeline_mode<synchronous>, transform_indices = @transform_1, window_bounds = array<i64: 16, 16>}, {pipeline_mode = #tpu.pipeline_mode<synchronous>, transform_indices = @transform_2, window_bounds = array<i64: 1, 16>}, {transform_indices = @transform_3, window_bounds = array<i64: 16, 16>}]} {
    %c0 = arith.constant 0 : index
    %c0_0 = arith.constant 0 : index
    %0 = vector.load %arg2[%c0, %c0_0] : memref<16x16xf32, #tpu.memory_space<vmem>>, vector<16x16xf32>
    %c0_1 = arith.constant 0 : index
    %c0_2 = arith.constant 0 : index
    %1 = vector.load %arg1[%c0_1, %c0_2] : memref<16x16xf32, #tpu.memory_space<vmem>>, vector<16x16xf32>
    %cst = arith.constant dense<0.000000e+00> : vector<16x16xf32>
    %2 = tpu.matmul %1, %0, %cst {dimension_numbers = #tpu.dot_dimension_numbers<[1], [0], [0], [1], [0, 0, 1, 1], [], []>} : vector<16x16xf32>, vector<16x16xf32>, vector<16x16xf32> -> vector<16x16xf32>
    %c0_3 = arith.constant 0 : index
    %c0_4 = arith.constant 0 : index
    %3 = vector.load %arg3[%c0_3, %c0_4] : memref<1x16xf32, #tpu.memory_space<vmem>>, vector<1x16xf32>
    %4 = vector.broadcast %3 : vector<1x16xf32> to vector<16x16xf32>
    %5 = arith.addf %2, %4 : vector<16x16xf32>
    %c0_5 = arith.constant 0 : index
    %c0_6 = arith.constant 0 : index
    %6 = vector.load %arg4[%c0_5, %c0_6] : memref<16x16xf32, #tpu.memory_space<vmem>>, vector<16x16xf32>
    tpu.vector_store %arg4[%c0_5, %c0_6], %5 {strides = array<i32>} : memref<16x16xf32, #tpu.memory_space<vmem>>, vector<16x16xf32>,
    return
  }
  func.func @transform_0(%arg0: i32) -> (i32, i32) {
    %c0_i32 = arith.constant 0 : i32
    %c0_i32_0 = arith.constant 0 : i32
    return %arg0, %c0_i32 : i32, i32
  }
  func.func @transform_1(%arg0: i32) -> (i32, i32) {
    %c0_i32 = arith.constant 0 : i32
    %c0_i32_0 = arith.constant 0 : i32
    %c0_i32_1 = arith.constant 0 : i32
    return %c0_i32, %c0_i32_0 : i32, i32
  }
  func.func @transform_2(%arg0: i32) -> (i32, i32) {
    %c0_i32 = arith.constant 0 : i32
    %c0_i32_0 = arith.constant 0 : i32
    %c0_i32_1 = arith.constant 0 : i32
    return %c0_i32, %c0_i32_0 : i32, i32
  }
  func.func @transform_3(%arg0: i32) -> (i32, i32) {
    %c0_i32 = arith.constant 0 : i32
    %c0_i32_0 = arith.constant 0 : i32
    return %arg0, %c0_i32 : i32, i32
  }
}

</mosaic_0001>

<bundles_post_ra>
// kernel: tpu_custom_call.1
= control target key start
LH: loop header
LB: loop body
LE: loop exit
PB: predicated region body
PF: predicated region fallthrough
CT: control target
= control target key end

     0   :  { %8 = vsyncpa [#allocation3], 0  ;;  %s379_s0 = inlined_call_operand.hbm [shape: f32[16,16], index: 0, kind: input, shape index: {}]   ;;  %s380_s1 = inlined_call_operand.hbm [shape: f32[16,16], index: 1, kind: input, shape index: {}]   ;;  %s381_s2 = inlined_call_operand.hbm [shape: f32[1,16], index: 2, kind: input, shape index: {}]   ;;  %s382_s3 = inlined_call_operand.hbm [shape: f32[16,16], index: 3, kind: output, shape index: {}]  }
   0x1   :  { %9 = vsyncpa [#allocation6], 0 }
   0x2   :  { %10 = vsyncpa [#allocation4], 0  ;;  %s285_s12 = smov [#allocation5]   ;;  %s286_s14 = smov [#allocation2]  }
   0x3   :  { %s28_s13 = sshll.u32 %s285_s12, 4  ;;  %s16_s15 = sshll.u32 %s286_s14, 4  ;;  %s29_s13 = int_to_ptr.vmem [resolvable:$true] %s28_s13  ;;  %s311_s15 = int_to_ptr.vmem [resolvable:$true] %s16_s15 }
   0x4   :  { %s191_s18 = scalar_lea.hbm %s380_s1, 256 }
   0x5   :  { %p192_p0 = scmp.ne.s32.totalorder %s380_s1, %s191_s18  ;;  %p195_p1 = scmp.lt.u32.totalorder %s191_s18, %s380_s1 }
   0x7   :  { %p197_p2 = pnand %p195_p1, %p192_p0 }
   0x9   :  { %200 = shalt.err (!%p197_p2)
}
   0xa   :  { %s201_s23 = scalar_lea.vmem %s29_s13, 256  ;;  %p206_p4 = scmp.lt.s32.totalorder %s29_s13, %s29_s13 }
   0xb   :  { %p202_p3 = scmp.ne.s32.totalorder %s29_s13, %s201_s23  ;;  %p207_p5 = scmp.lt.s32.totalorder %s201_s23, %s201_s23 }
   0xd   :  { %p208_p6 = por %p207_p5, %p206_p4 }
   0xf   :  { %p209_p7 = pnand %p208_p6, %p202_p3 }
  0x11   :  { %212 = shalt.err (!%p209_p7)
}
  0x12   :  { %s287_s24 = smov 128   ;;  %s288_s25 = smov 8  }
  0x13   :  { %34 = dma.hbm_to_vmem [thread:$0]  %s380_s1, 256, %s29_s13, [#allocation6], %s287_s24, %s287_s24, %s288_s25  }
  0x14   :  { %s213_s30 = scalar_lea.hbm %s379_s0, 256 }
  0x15   :  { %p214_p8 = scmp.ne.s32.totalorder %s379_s0, %s213_s30  ;;  %p217_p9 = scmp.lt.u32.totalorder %s213_s30, %s379_s0 }
  0x17   :  { %p219_p10 = pnand %p217_p9, %p214_p8 }
  0x19   :  { %222 = shalt.err (!%p219_p10)
}
  0x1a   :  { %s223_s8 = scalar_lea.vmem %s311_s15, 256  ;;  %p228_p12 = scmp.lt.s32.totalorder %s311_s15, %s311_s15 }
  0x1b   :  { %p224_p11 = scmp.ne.s32.totalorder %s311_s15, %s223_s8  ;;  %p229_p13 = scmp.lt.s32.totalorder %s223_s8, %s223_s8 }
  0x1d   :  { %p230_p0 = por %p229_p13, %p228_p12 }
  0x1f   :  { %p231_p1 = pnand %p230_p0, %p224_p11 }
  0x21   :  { %234 = shalt.err (!%p231_p1)
}
  0x22   :  { %22 = dma.hbm_to_vmem [thread:$0]  %s379_s0, 256, %s311_s15, [#allocation3], %s287_s24, %s287_s24, %s288_s25  }
  0x23   :  { %s289_s10 = smov [#allocation7]   ;;  %s235_s14 = scalar_lea.hbm %s381_s2, 16 }
  0x24   :  { %s41_s11 = sshll.u32 %s289_s10, 4  ;;  %p236_p2 = scmp.ne.s32.totalorder %s381_s2, %s235_s14  ;;  %s42_s11 = int_to_ptr.vmem [resolvable:$true] %s41_s11 }
  0x25   :  { %p239_p3 = scmp.lt.u32.totalorder %s235_s14, %s381_s2 }
  0x27   :  { %p241_p4 = pnand %p239_p3, %p236_p2 }
  0x29   :  { %244 = shalt.err (!%p241_p4)
}
  0x2a   :  { %s245_s20 = scalar_lea.vmem %s42_s11, 16  ;;  %s249_s0 = scalar_lea.vmem %s42_s11, 32 }
  0x2b   :  { %p246_p5 = scmp.ne.s32.totalorder %s42_s11, %s245_s20  ;;  %p250_p6 = scmp.lt.s32.totalorder %s42_s11, %s42_s11 }
  0x2c   :  { %p251_p7 = scmp.lt.s32.totalorder %s249_s0, %s245_s20 }
  0x2e   :  { %p252_p8 = por %p251_p7, %p250_p6 }
  0x30   :  { %p253_p9 = pnand %p252_p8, %p246_p5 }
  0x32   :  { %256 = shalt.err (!%p253_p9)
}
  0x33   :  { %44 = dma.hbm_to_vmem [thread:$0]  %s381_s2, 16, %s42_s11, [#allocation6]  }
  0x34   :  { %279 = dma.done.wait [#allocation3], 256  }
  0x35   :  { %280 = vsyncadd [#allocation3], 4294967040 }
  0x36   :  { %281 = dma.done.wait [#allocation6], 272  }
  0x37   :  { %282 = vsyncadd [#allocation6], 4294967024  ;;  %vm65_vm0 = vcmask 130048   ;;  %v54_v0 = vld [vmem:[#allocation5] sm:$0xff]  ;;  %v55_v1 = vld [vmem:[#allocation5 + $0x8] sm:$0xff]  ;;  %s290_s22 = smov [#allocation8]  }
  0x38   :  { %v56_v2 = vld [vmem:[#allocation2] sm:$0xff]  ;;  %v181_v3 = vpack.c.bf16 %v55_v1, %v54_v0  ;;  %v57_v4 = vld [vmem:[#allocation2 + $0x8] sm:$0xff]  ;;  %s154_s23 = sshll.u32 %s290_s22, 4  ;;  %s155_s23 = int_to_ptr.vmem [resolvable:$true] %s154_s23 }
  0x39   :  { %178 = vmatprep.mubr.msk.f32.mxu0 %vm65_vm0, %v56_v2  ;;  %v167_v5 = vld [vmem:[#allocation7] ss:$0 sm:$0xff]  ;;  %s257_s2 = scalar_lea.vmem %s155_s23, 256  ;;  %p262_p11 = scmp.lt.s32.totalorder %s155_s23, %s155_s23 }
  0x3a   :  { %182 = vmatprep.subr.bf16.mxu0 %v181_v3  ;;  %p258_p10 = scmp.ne.s32.totalorder %s155_s23, %s257_s2  ;;  %p263_p12 = scmp.lt.s32.totalorder %s257_s2, %s257_s2 }
  0x3b   :  { %184 = vmatpush3.bf16.msra.mxu0 %v181_v3 }
  0x3c   :  { %p264_p13 = por %p263_p12, %p262_p11 }
  0x3e   :  { %179 = vmatmul.mubr.msk.f32.vlgmr.msra.gmra.mrb[0].mxu0 %vm65_vm0, %v57_v4  ;;  %p265_p0 = pnand %p264_p13, %p258_p10 }
 0x111   :  { %v180_v6 = vpop.f32.mrb[0].mxu0 }
 0x112   :  { %v144_v7 = vadd.f32 %v180_v6, %v167_v5  ;;  %v138_v8 = vpop.f32.mrb[1].mxu0 }
 0x113   :  { %v139_v9 = vadd.f32 %v167_v5, %v138_v8 }
 0x114   :  { %148 = vst.msk [vmem:[#allocation8 + $0x8] sm:$0xff] %vm65_vm0, %v144_v7 }
 0x115   :  { %147 = vst.msk [vmem:[#allocation8] sm:$0xff] %vm65_vm0, %v139_v9 }
 0x116   :  { %268 = shalt.err (!%p265_p0)
}
 0x117   :  { %s269_s28 = scalar_lea.hbm %s382_s3, 256 }
 0x118   :  { %p270_p1 = scmp.ne.s32.totalorder %s382_s3, %s269_s28  ;;  %p273_p2 = scmp.lt.u32.totalorder %s269_s28, %s382_s3 }
 0x11a   :  { %p275_p3 = pnand %p273_p2, %p270_p1 }
 0x11c   :  { %278 = shalt.err (!%p275_p3)
}
 0x11d   :  { %160 = dma.vmem_to_hbm [thread:$0]  %s155_s23, 256, %s382_s3, [#allocation4], %s287_s24, %s287_s24, %s288_s25  }
 0x11e   :  { %283 = dma.done.wait [#allocation4], 256  }
 0x11f   :  { %284 = vsyncadd [#allocation4], 4294967040 }
 0x120   :  { %164 = vsyncpa [#allocation3], 1 }
 0x121   :  { %165 = vsyncpa [#allocation6], 1 }
 0x122   :  { %166 = vsyncpa [#allocation4], 1 }

</bundles_post_ra>
